<compile_context>
chip_gen: v6e
topology: v6e:2x2x1
jax: 0.10.0
libtpu: 0.0.40
codegen_flags: <defaults>
</compile_context>

<pallas_src>
import jax
import jax.numpy as jnp
from jax.experimental import pallas as pl
from jax.experimental.pallas import tpu as pltpu

_LANE = 128
_MAX_COLS = 16384              # widest lane-dense slab we will present
_TARGET_BLOCK_BYTES = 2 << 20  # ~2 MiB per array per grid step


def _identity_copy_kernel(x_ref, rev_x_ref, x_out_ref, rev_x_out_ref):
    # Identity forward: out = (x, rev_x)
    x_out_ref[...] = x_ref[...]
    rev_x_out_ref[...] = rev_x_ref[...]


def _lane_dense_2d(shape):
    """Pick a (rows, cols) view of `shape` with cols a wide multiple of 128."""
    total = 1
    for d in shape:
        total *= d
    if total % _LANE == 0:
        cols = _LANE
        while cols * 2 <= _MAX_COLS and total % (cols * 2) == 0:
            cols *= 2
    else:
        # No clean lane-dense reshape possible; keep the original trailing dim
        # (block then spans the full last dim, which still satisfies BlockSpec).
        cols = shape[-1]
    return total // cols, cols


@jax.jit
def demb_embed_forward(x, masks, rev_x, rev_masks):
    """Pallas equivalent of DembEmbed.forward: returns (x, rev_x) unchanged."""
    del masks, rev_masks  # unused, exactly as in the PyTorch module
    assert x.shape == rev_x.shape and x.dtype == rev_x.dtype
    orig_shape = x.shape

    # Lane-dense 2D layout (layout plumbing only; reshape is a bitcast).
    rows, cols = _lane_dense_2d(orig_shape)
    x2 = x.reshape(rows, cols)
    rev2 = rev_x.reshape(rows, cols)

    # Large blocks: target ~2 MiB per array per step; multiple of 8 sublanes.
    itemsize = jnp.dtype(x.dtype).itemsize
    rows_per_target = max(1, _TARGET_BLOCK_BYTES // (cols * itemsize))
    if rows_per_target >= rows:
        block_rows = rows  # single block covers the whole array
    else:
        block_rows = min(rows, max(8, (rows_per_target // 8) * 8))
    grid = (pl.cdiv(rows, block_rows),)

    spec = pl.BlockSpec((block_rows, cols), lambda i: (i, 0))

    x_out, rev_out = pl.pallas_call(
        _identity_copy_kernel,
        out_shape=(
            jax.ShapeDtypeStruct((rows, cols), x.dtype),
            jax.ShapeDtypeStruct((rows, cols), rev_x.dtype),
        ),
        grid=grid,
        in_specs=[spec, spec],
        out_specs=(spec, spec),
        # Alias outputs onto the (flattened) inputs: avoids allocating new HBM
        # output buffers whenever the caller's buffers can be donated.
        input_output_aliases={0: 0, 1: 1},
        compiler_params=pltpu.CompilerParams(
            dimension_semantics=("parallel",),
            vmem_limit_bytes=32 * 1024 * 1024,
        ),
    )(x2, rev2)

    return x_out.reshape(orig_shape), rev_out.reshape(orig_shape)


if __name__ == "__main__":
    key = jax.random.PRNGKey(0)
    k1, k2 = jax.random.split(key)

    batch, seq, hidden = 2, 8, 32  # small pre-embedded inputs

    x = jax.random.normal(k1, (batch, seq, hidden), dtype=jnp.float32)
    rev_x = jax.random.normal(k2, (batch, seq, hidden), dtype=jnp.float32)
    masks = jnp.ones((batch, seq), dtype=jnp.float32)
    rev_masks = jnp.ones((batch, seq), dtype=jnp.float32)

    out_x, out_rev_x = demb_embed_forward(x, masks, rev_x, rev_masks)
    jax.block_until_ready((out_x, out_rev_x))

    assert out_x.shape == x.shape and out_rev_x.shape == rev_x.shape
    assert jnp.array_equal(out_x, x)
    assert jnp.array_equal(out_rev_x, rev_x)
    print("KERNEL_OK")
</pallas_src>

<mosaic_0001>
module attributes {stable_mosaic.version = 11 : i64} {
  func.func @_identity_copy_kernel(%arg0: i32, %arg1: memref<1x512xf32, #tpu.memory_space<vmem>>, %arg2: memref<1x512xf32, #tpu.memory_space<vmem>>, %arg3: memref<1x512xf32, #tpu.memory_space<vmem>>, %arg4: memref<1x512xf32, #tpu.memory_space<vmem>>) attributes {dimension_semantics = [#tpu.dimension_semantics<parallel>], iteration_bounds = array<i64: 1>, scalar_prefetch = 0 : i64, scratch_operands = 0 : i64, tpu.core_type = #tpu.core_type<tc>, window_params = [{transform_indices = @transform_0, window_bounds = array<i64: 1, 512>}, {transform_indices = @transform_1, window_bounds = array<i64: 1, 512>}, {transform_indices = @transform_2, window_bounds = array<i64: 1, 512>}, {transform_indices = @transform_3, window_bounds = array<i64: 1, 512>}]} {
    %c0 = arith.constant 0 : index
    %c0_0 = arith.constant 0 : index
    %0 = vector.load %arg1[%c0, %c0_0] : memref<1x512xf32, #tpu.memory_space<vmem>>, vector<1x512xf32>
    %c0_1 = arith.constant 0 : index
    %c0_2 = arith.constant 0 : index
    %1 = vector.load %arg3[%c0_1, %c0_2] : memref<1x512xf32, #tpu.memory_space<vmem>>, vector<1x512xf32>
    tpu.vector_store %arg3[%c0_1, %c0_2], %0 {strides = array<i32>} : memref<1x512xf32, #tpu.memory_space<vmem>>, vector<1x512xf32>,
    %c0_3 = arith.constant 0 : index
    %c0_4 = arith.constant 0 : index
    %2 = vector.load %arg2[%c0_3, %c0_4] : memref<1x512xf32, #tpu.memory_space<vmem>>, vector<1x512xf32>
    %c0_5 = arith.constant 0 : index
    %c0_6 = arith.constant 0 : index
    %3 = vector.load %arg4[%c0_5, %c0_6] : memref<1x512xf32, #tpu.memory_space<vmem>>, vector<1x512xf32>
    tpu.vector_store %arg4[%c0_5, %c0_6], %2 {strides = array<i32>} : memref<1x512xf32, #tpu.memory_space<vmem>>, vector<1x512xf32>,
    return
  }
  func.func @transform_0(%arg0: i32) -> (i32, i32) {
    %c0_i32 = arith.constant 0 : i32
    %c0_i32_0 = arith.constant 0 : i32
    return %arg0, %c0_i32 : i32, i32
  }
  func.func @transform_1(%arg0: i32) -> (i32, i32) {
    %c0_i32 = arith.constant 0 : i32
    %c0_i32_0 = arith.constant 0 : i32
    return %arg0, %c0_i32 : i32, i32
  }
  func.func @transform_2(%arg0: i32) -> (i32, i32) {
    %c0_i32 = arith.constant 0 : i32
    %c0_i32_0 = arith.constant 0 : i32
    return %arg0, %c0_i32 : i32, i32
  }
  func.func @transform_3(%arg0: i32) -> (i32, i32) {
    %c0_i32 = arith.constant 0 : i32
    %c0_i32_0 = arith.constant 0 : i32
    return %arg0, %c0_i32 : i32, i32
  }
}

</mosaic_0001>

<bundles_post_ra>
// kernel: demb_embed_forward.1
= control target key start
LH: loop header
LB: loop body
LE: loop exit
PB: predicated region body
PF: predicated region fallthrough
CT: control target
= control target key end

     0   :  { %v14_v0 = vlaneseq  ;;  %s61_s0 = inlined_call_operand.vmem [shape: f32[1,512], index: 0, kind: input, shape index: {}, may-alias: {0,2}]   ;;  %s62_s2 = inlined_call_operand.vmem [shape: f32[1,512], index: 2, kind: output, shape index: {0}, may-alias: {0,2}]   ;;  %s63_s1 = inlined_call_operand.vmem [shape: f32[1,512], index: 1, kind: input, shape index: {}, may-alias: {1,3}]   ;;  %s64_s3 = inlined_call_operand.vmem [shape: f32[1,512], index: 3, kind: output, shape index: {1}, may-alias: {1,3}]  }
   0x1   :  { %v13_v1 = vld [vmem:[%s61_s0] sm:$0xf] }
   0x2   :  { %v19_v2 = vld [vmem:[%s63_s1] sm:$0xf]  ;;  %vm16_vm0 = vcmp.lt.s32.totalorder %v14_v0, 512 }
   0x3   :  { %18 = vst.msk [vmem:[%s62_s2] sm:$0xf] %vm16_vm0, %v13_v1  ;;  %20 = vst.msk [vmem:[%s64_s3] sm:$0xf] %vm16_vm0, %v19_v2 }

</bundles_post_ra>
